<compile_context>
chip_gen: v7x
topology: tpu7x:2x2x1
jax: 0.10.0
libtpu: 0.0.40
codegen_flags: <defaults>
</compile_context>

<pallas_src>
import functools

import jax
import jax.numpy as jnp
from jax.experimental import pallas as pl
from jax.experimental.pallas import tpu as pltpu


def _round_up(n, m):
    return ((n + m - 1) // m) * m


def _pad_last(a, target):
    pad = target - a.shape[-1]
    if pad == 0:
        return a
    return jnp.pad(a, [(0, 0)] * (a.ndim - 1) + [(0, pad)])


def teacher_rnn_kernel(x_ref, h0_ref, wi_ref, wh_ref, bi_ref, bh_ref, wout_ref, bout_ref,
                       probs_ref, hout_ref, gi_ref, *, hp, tc, t_total):
    """One chunk of `tc` GRU steps per grid iteration; hidden carried in hout_ref."""
    c = pl.program_id(0)
    wdtype = wh_ref.dtype

    # Initialize the resident hidden carry (padded lanes are zero) on the first chunk.
    @pl.when(c == 0)
    def _():
        hout_ref[...] = h0_ref[...]

    # Batched input-side matmul for the whole chunk: gi = [i_r+b_r | i_z+b_z | i_n+b_in].
    gi_ref[...] = jnp.dot(x_ref[...].astype(wdtype), wi_ref[...],
                          preferred_element_type=jnp.float32) + bi_ref[...]

    # Last chunk may be partial; padded rows are never touched by the loop.
    n_steps = jnp.minimum(tc, t_total - c * tc)

    def step(s, h):
        gi = gi_ref[pl.ds(s, 1), :]                                   # (1, 3*Hp)
        gh = jnp.dot(h.astype(wdtype), wh_ref[...],
                     preferred_element_type=jnp.float32) + bh_ref[...]  # [h_r | h_z | h_n+b_hn]
        r = jax.nn.sigmoid(gi[:, 0 * hp:1 * hp] + gh[:, 0 * hp:1 * hp])
        z = jax.nn.sigmoid(gi[:, 1 * hp:2 * hp] + gh[:, 1 * hp:2 * hp])
        n = jnp.tanh(gi[:, 2 * hp:3 * hp] + r * gh[:, 2 * hp:3 * hp])
        h_new = (1.0 - z) * n + z * h                                 # padded lanes stay 0

        # Output layer; 1/temperature and the -1e30 pad mask are already folded into wout/bout.
        logits = jnp.dot(h_new.astype(wdtype), wout_ref[...],
                         preferred_element_type=jnp.float32) + bout_ref[...]
        m = jnp.max(logits, axis=-1, keepdims=True)
        e = jnp.exp(logits - m)
        probs_ref[pl.ds(s, 1), :] = e / jnp.sum(e, axis=-1, keepdims=True)
        return h_new

    h_final = jax.lax.fori_loop(0, n_steps, step, hout_ref[...])
    hout_ref[...] = h_final


def prepare_params(params, weight_dtype=jnp.bfloat16):
    """One-time prep: transpose, fuse gate matmuls, merge biases, pad to 128-lane blocks."""
    w_ih, w_hh = params["w_ih"], params["w_hh"]            # (3H, I), (3H, H)
    b_ih, b_hh = params["b_ih"], params["b_hh"]            # (3H,), (3H,)
    w_out, b_out = params["w_out"], params["b_out"]        # (O, H), (O,)

    H = w_hh.shape[1]
    I = w_ih.shape[1]
    O = w_out.shape[0]
    Hp, Ip, Op = _round_up(H, 128), _round_up(I, 128), _round_up(O, 128)

    W_ir, W_iz, W_in = w_ih[0:H], w_ih[H:2 * H], w_ih[2 * H:3 * H]
    W_hr, W_hz, W_hn = w_hh[0:H], w_hh[H:2 * H], w_hh[2 * H:3 * H]

    # Input-side fused weight: column blocks (each Hp wide): [r | z | n].
    wi = jnp.zeros((Ip, 3 * Hp), jnp.float32)
    wi = wi.at[0:I, 0 * Hp:0 * Hp + H].set(W_ir.T)
    wi = wi.at[0:I, 1 * Hp:1 * Hp + H].set(W_iz.T)
    wi = wi.at[0:I, 2 * Hp:2 * Hp + H].set(W_in.T)

    # Hidden-side fused weight: same column-block layout.
    wh = jnp.zeros((Hp, 3 * Hp), jnp.float32)
    wh = wh.at[0:H, 0 * Hp:0 * Hp + H].set(W_hr.T)
    wh = wh.at[0:H, 1 * Hp:1 * Hp + H].set(W_hz.T)
    wh = wh.at[0:H, 2 * Hp:2 * Hp + H].set(W_hn.T)

    # r/z biases fused into the input-side bias; b_hn kept on the hidden side (inside r*()).
    bi = jnp.zeros((1, 3 * Hp), jnp.float32)
    bi = bi.at[0, 0 * Hp:0 * Hp + H].set(b_ih[0:H] + b_hh[0:H])            # b_ir + b_hr
    bi = bi.at[0, 1 * Hp:1 * Hp + H].set(b_ih[H:2 * H] + b_hh[H:2 * H])    # b_iz + b_hz
    bi = bi.at[0, 2 * Hp:2 * Hp + H].set(b_ih[2 * H:3 * H])                # b_in
    bh = jnp.zeros((1, 3 * Hp), jnp.float32)
    bh = bh.at[0, 2 * Hp:2 * Hp + H].set(b_hh[2 * H:3 * H])                # b_hn

    wout = jnp.zeros((Hp, Op), jnp.float32).at[0:H, 0:O].set(w_out.T)
    bout = jnp.zeros((1, Op), jnp.float32).at[0, 0:O].set(b_out)
    out_mask = jnp.zeros((1, Op), jnp.float32).at[0, O:].set(-1e30)        # softmax pad mask

    return dict(wi=wi.astype(weight_dtype), wh=wh.astype(weight_dtype),
                wout=wout.astype(weight_dtype), bi=bi, bh=bh, bout=bout, out_mask=out_mask,
                H=H, I=I, O=O, Hp=Hp, Ip=Ip, Op=Op)


def _teacher_rnn_call(x_seq, h0, prepared, temperature):
    """x_seq: (T, I) f32, h0: (1, H) f32 -> (probs (T, O), h_final (1, H))."""
    H, I, O = prepared["H"], prepared["I"], prepared["O"]
    Hp, Ip, Op = prepared["Hp"], prepared["Ip"], prepared["Op"]
    T = x_seq.shape[0]

    TC = 8 if T <= 8 else 32                       # timesteps per grid iteration
    Tp = _round_up(T, TC)

    xp = jnp.zeros((Tp, Ip), jnp.float32).at[:T, :I].set(x_seq.astype(jnp.float32))
    hp0 = _pad_last(h0.astype(jnp.float32), Hp)

    # Fold 1/temperature into the output layer; bake the padding mask into the bias.
    invt = 1.0 / jnp.asarray(temperature, jnp.float32)
    wdtype = prepared["wh"].dtype
    wout = (prepared["wout"].astype(jnp.float32) * invt).astype(wdtype)
    bout = prepared["bout"] * invt + prepared["out_mask"]

    kernel = functools.partial(teacher_rnn_kernel, hp=Hp, tc=TC, t_total=T)
    grid_spec = pltpu.PrefetchScalarGridSpec(
        num_scalar_prefetch=0,
        grid=(Tp // TC,),
        in_specs=[
            pl.BlockSpec((TC, Ip), lambda c: (c, 0)),          # x chunk
            pl.BlockSpec((1, Hp), lambda c: (0, 0)),           # h0
            pl.BlockSpec((Ip, 3 * Hp), lambda c: (0, 0)),      # wi (resident)
            pl.BlockSpec((Hp, 3 * Hp), lambda c: (0, 0)),      # wh (resident)
            pl.BlockSpec((1, 3 * Hp), lambda c: (0, 0)),       # bi
            pl.BlockSpec((1, 3 * Hp), lambda c: (0, 0)),       # bh
            pl.BlockSpec((Hp, Op), lambda c: (0, 0)),          # wout (scaled)
            pl.BlockSpec((1, Op), lambda c: (0, 0)),           # bout (scaled + masked)
        ],
        out_specs=(
            pl.BlockSpec((TC, Op), lambda c: (c, 0)),          # probs chunk
            pl.BlockSpec((1, Hp), lambda c: (0, 0)),           # hidden carry / final
        ),
        scratch_shapes=[pltpu.VMEM((TC, 3 * Hp), jnp.float32)],  # per-chunk gi
    )
    probs_p, h_p = pl.pallas_call(
        kernel,
        grid_spec=grid_spec,
        out_shape=(jax.ShapeDtypeStruct((Tp, Op), jnp.float32),
                   jax.ShapeDtypeStruct((1, Hp), jnp.float32)),
        compiler_params=pltpu.CompilerParams(dimension_semantics=("arbitrary",)),
    )(xp, hp0, prepared["wi"], prepared["wh"], prepared["bi"], prepared["bh"], wout, bout)

    return probs_p[:T, :O], h_p[:, :H]


def teacher_rnn_forward(x, hidden, prepared, temperature=1.0):
    """Single step, matching PyTorch forward: returns (probs (1,O), hidden (1,1,H))."""
    H, I = prepared["H"], prepared["I"]
    x2 = jnp.asarray(x, jnp.float32).reshape(1, I)          # .view(1, 1, -1)
    h2 = jnp.asarray(hidden, jnp.float32).reshape(1, H)
    probs, h_new = _teacher_rnn_call(x2, h2, prepared, temperature)
    return probs, h_new.reshape(1, 1, H)


def teacher_rnn_rollout(x_seq, hidden, prepared, temperature=1.0):
    """Sequence version (amortizes launch + weight DMA): (probs (T,O), hidden (1,1,H))."""
    H = prepared["H"]
    h2 = jnp.asarray(hidden, jnp.float32).reshape(1, H)
    probs, h_new = _teacher_rnn_call(jnp.asarray(x_seq, jnp.float32), h2, prepared, temperature)
    return probs, h_new.reshape(1, 1, H)


def init_params(key, input_size, hidden_size, output_size):
    """Deterministic init mimicking PyTorch defaults (uniform +-1/sqrt(hidden))."""
    ks = jax.random.split(key, 6)
    bound = 1.0 / jnp.sqrt(jnp.float32(hidden_size))
    u = lambda k, shape: jax.random.uniform(k, shape, jnp.float32, -bound, bound)
    return {
        "w_ih": u(ks[0], (3 * hidden_size, input_size)),
        "w_hh": u(ks[1], (3 * hidden_size, hidden_size)),
        "b_ih": u(ks[2], (3 * hidden_size,)),
        "b_hh": u(ks[3], (3 * hidden_size,)),
        "w_out": u(ks[4], (output_size, hidden_size)),
        "b_out": u(ks[5], (output_size,)),
    }


def _gru_step_ref(x, h, params, temperature):
    """Pure-JAX reference of the PyTorch module (for verification)."""
    H = h.shape[-1]
    gi = x @ params["w_ih"].T + params["b_ih"]
    gh = h @ params["w_hh"].T + params["b_hh"]
    i_r, i_z, i_n = gi[..., :H], gi[..., H:2 * H], gi[..., 2 * H:]
    h_r, h_z, h_n = gh[..., :H], gh[..., H:2 * H], gh[..., 2 * H:]
    r = jax.nn.sigmoid(i_r + h_r)
    z = jax.nn.sigmoid(i_z + h_z)
    n = jnp.tanh(i_n + r * h_n)
    h_new = (1.0 - z) * n + z * h
    logits = h_new @ params["w_out"].T + params["b_out"]
    return jax.nn.softmax(logits / temperature, axis=-1), h_new


if __name__ == "__main__":
    input_size, hidden_size, output_size = 16, 32, 8
    temperature = 1.5
    T = 40                                     # exercises multi-chunk + partial last chunk

    key = jax.random.PRNGKey(0)
    k_params, k_x, k_seq = jax.random.split(key, 3)
    params = init_params(k_params, input_size, hidden_size, output_size)

    prepared_f32 = prepare_params(params, weight_dtype=jnp.float32)   # exactness check
    prepared_bf16 = prepare_params(params)                            # default: bf16 weights

    # ---- single-step forward (same semantics as the PyTorch module), f32 weights ----
    x = jax.random.normal(k_x, (input_size,), jnp.float32)
    hidden0 = jnp.zeros((1, 1, hidden_size), jnp.float32)             # initHidden()
    probs, hidden1 = teacher_rnn_forward(x, hidden0, prepared_f32, temperature)
    jax.block_until_ready((probs, hidden1))

    probs_ref, h_ref = _gru_step_ref(x.reshape(1, -1), hidden0.reshape(1, -1), params, temperature)
    assert probs.shape == (1, output_size)
    assert hidden1.shape == (1, 1, hidden_size)
    assert jnp.allclose(hidden1.reshape(1, -1), h_ref, atol=1e-5, rtol=1e-4)
    assert jnp.allclose(probs, probs_ref, atol=1e-4, rtol=1e-4)
    assert jnp.allclose(jnp.sum(probs), 1.0, atol=1e-5)

    # ---- multi-step rollout (one launch, weights resident, TC steps per grid iter), f32 ----
    x_seq = jax.random.normal(k_seq, (T, input_size), jnp.float32)
    probs_seq, h_final = teacher_rnn_rollout(x_seq, hidden0, prepared_f32, temperature)
    jax.block_until_ready((probs_seq, h_final))

    h = hidden0.reshape(1, -1)
    ref_list = []
    for t in range(T):
        p, h = _gru_step_ref(x_seq[t:t + 1], h, params, temperature)
        ref_list.append(p)
    ref_seq = jnp.concatenate(ref_list, axis=0)
    assert probs_seq.shape == (T, output_size)
    assert jnp.allclose(probs_seq, ref_seq, atol=1e-4, rtol=1e-3)
    assert jnp.allclose(h_final.reshape(1, -1), h, atol=1e-4, rtol=1e-3)

    # ---- same rollout with bf16 weights (default perf config): looser tolerance ----
    probs_bf, h_bf = teacher_rnn_rollout(x_seq, hidden0, prepared_bf16, temperature)
    jax.block_until_ready((probs_bf, h_bf))
    assert jnp.allclose(probs_bf, ref_seq, atol=5e-2, rtol=5e-2)
    assert jnp.allclose(h_bf.reshape(1, -1), h, atol=5e-2, rtol=5e-2)
    assert jnp.allclose(jnp.sum(probs_bf, axis=-1), 1.0, atol=1e-4)

    print("KERNEL_OK")
</pallas_src>

<mosaic_0001>
module attributes {stable_mosaic.version = 11 : i64} {
  func.func @teacher_rnn_kernel(%arg0: i32, %arg1: memref<8x128xf32, #tpu.memory_space<vmem>>, %arg2: memref<1x128xf32, #tpu.memory_space<vmem>>, %arg3: memref<128x384xf32, #tpu.memory_space<vmem>>, %arg4: memref<128x384xf32, #tpu.memory_space<vmem>>, %arg5: memref<1x384xf32, #tpu.memory_space<vmem>>, %arg6: memref<1x384xf32, #tpu.memory_space<vmem>>, %arg7: memref<128x128xf32, #tpu.memory_space<vmem>>, %arg8: memref<1x128xf32, #tpu.memory_space<vmem>>, %arg9: memref<8x128xf32, #tpu.memory_space<vmem>>, %arg10: memref<1x128xf32, #tpu.memory_space<vmem>>, %arg11: memref<8x384xf32, #tpu.memory_space<vmem>>) attributes {dimension_semantics = [#tpu.dimension_semantics<arbitrary>], iteration_bounds = array<i64: 1>, scalar_prefetch = 0 : i64, scratch_operands = 1 : i64, tpu.core_type = #tpu.core_type<tc>, window_params = [{transform_indices = @transform_0, window_bounds = array<i64: 8, 128>}, {pipeline_mode = #tpu.pipeline_mode<synchronous>, transform_indices = @transform_1, window_bounds = array<i64: 1, 128>}, {pipeline_mode = #tpu.pipeline_mode<synchronous>, transform_indices = @transform_2, window_bounds = array<i64: 128, 384>}, {pipeline_mode = #tpu.pipeline_mode<synchronous>, transform_indices = @transform_3, window_bounds = array<i64: 128, 384>}, {pipeline_mode = #tpu.pipeline_mode<synchronous>, transform_indices = @transform_4, window_bounds = array<i64: 1, 384>}, {pipeline_mode = #tpu.pipeline_mode<synchronous>, transform_indices = @transform_5, window_bounds = array<i64: 1, 384>}, {pipeline_mode = #tpu.pipeline_mode<synchronous>, transform_indices = @transform_6, window_bounds = array<i64: 128, 128>}, {pipeline_mode = #tpu.pipeline_mode<synchronous>, transform_indices = @transform_7, window_bounds = array<i64: 1, 128>}, {transform_indices = @transform_8, window_bounds = array<i64: 8, 128>}, {pipeline_mode = #tpu.pipeline_mode<synchronous>, transform_indices = @transform_9, window_bounds = array<i64: 1, 128>}]} {
    %c0_i32 = arith.constant 0 : i32
    %0 = arith.cmpi eq, %arg0, %c0_i32 : i32
    %1 = arith.extui %0 : i1 to i32
    %c0_i32_0 = arith.constant 0 : i32
    %2 = arith.cmpi ne, %1, %c0_i32_0 : i32
    scf.if %2 {
      %c0_15 = arith.constant 0 : index
      %c0_16 = arith.constant 0 : index
      %18 = vector.load %arg2[%c0_15, %c0_16] : memref<1x128xf32, #tpu.memory_space<vmem>>, vector<1x128xf32>
      %c0_17 = arith.constant 0 : index
      %c0_18 = arith.constant 0 : index
      %19 = vector.load %arg10[%c0_17, %c0_18] : memref<1x128xf32, #tpu.memory_space<vmem>>, vector<1x128xf32>
      tpu.vector_store %arg10[%c0_17, %c0_18], %18 {strides = array<i32>} : memref<1x128xf32, #tpu.memory_space<vmem>>, vector<1x128xf32>,
    } else {
    }
    %c0 = arith.constant 0 : index
    %c0_1 = arith.constant 0 : index
    %3 = vector.load %arg1[%c0, %c0_1] : memref<8x128xf32, #tpu.memory_space<vmem>>, vector<8x128xf32>
    %c0_2 = arith.constant 0 : index
    %c0_3 = arith.constant 0 : index
    %4 = vector.load %arg3[%c0_2, %c0_3] : memref<128x384xf32, #tpu.memory_space<vmem>>, vector<128x384xf32>
    %cst = arith.constant dense<0.000000e+00> : vector<8x384xf32>
    %5 = tpu.matmul %3, %4, %cst {dimension_numbers = #tpu.dot_dimension_numbers<[1], [0], [0], [1], [0, 0, 1, 1], [], []>} : vector<8x128xf32>, vector<128x384xf32>, vector<8x384xf32> -> vector<8x384xf32>
    %c0_4 = arith.constant 0 : index
    %c0_5 = arith.constant 0 : index
    %6 = vector.load %arg5[%c0_4, %c0_5] : memref<1x384xf32, #tpu.memory_space<vmem>>, vector<1x384xf32>
    %7 = vector.broadcast %6 : vector<1x384xf32> to vector<8x384xf32>
    %8 = arith.addf %5, %7 : vector<8x384xf32>
    %c0_6 = arith.constant 0 : index
    %c0_7 = arith.constant 0 : index
    %9 = vector.load %arg11[%c0_6, %c0_7] : memref<8x384xf32, #tpu.memory_space<vmem>>, vector<8x384xf32>
    tpu.vector_store %arg11[%c0_6, %c0_7], %8 {strides = array<i32>} : memref<8x384xf32, #tpu.memory_space<vmem>>, vector<8x384xf32>,
    %c8_i32 = arith.constant 8 : i32
    %10 = arith.muli %arg0, %c8_i32 : i32
    %c1_i32 = arith.constant 1 : i32
    %11 = arith.subi %c1_i32, %10 : i32
    %c8_i32_8 = arith.constant 8 : i32
    %12 = arith.minsi %c8_i32_8, %11 : i32
    %c0_9 = arith.constant 0 : index
    %c0_10 = arith.constant 0 : index
    %13 = vector.load %arg10[%c0_9, %c0_10] : memref<1x128xf32, #tpu.memory_space<vmem>>, vector<1x128xf32>
    %c0_i32_11 = arith.constant 0 : i32
    %14 = arith.subi %12, %c0_i32_11 : i32
    %15 = arith.addi %c0_i32_11, %14 : i32
    %c1_i32_12 = arith.constant 1 : i32
    %16 = scf.for %arg12 = %c0_i32_11 to %15 step %c1_i32_12 iter_args(%arg13 = %13) -> (vector<1x128xf32>)  : i32 {
      %18 = arith.index_cast %arg12 : i32 to index
      %c0_15 = arith.constant 0 : index
      %19 = vector.load %arg11[%18, %c0_15] : memref<8x384xf32, #tpu.memory_space<vmem>>, vector<1x384xf32>
      %c0_16 = arith.constant 0 : index
      %c0_17 = arith.constant 0 : index
      %20 = vector.load %arg4[%c0_16, %c0_17] : memref<128x384xf32, #tpu.memory_space<vmem>>, vector<128x384xf32>
      %cst_18 = arith.constant dense<0.000000e+00> : vector<1x384xf32>
      %21 = tpu.matmul %arg13, %20, %cst_18 {dimension_numbers = #tpu.dot_dimension_numbers<[1], [0], [0], [1], [0, 0, 1, 1], [], []>} : vector<1x128xf32>, vector<128x384xf32>, vector<1x384xf32> -> vector<1x384xf32>
      %c0_19 = arith.constant 0 : index
      %c0_20 = arith.constant 0 : index
      %22 = vector.load %arg6[%c0_19, %c0_20] : memref<1x384xf32, #tpu.memory_space<vmem>>, vector<1x384xf32>
      %23 = arith.addf %21, %22 : vector<1x384xf32>
      %24 = vector.extract_strided_slice %19 {offsets = [0, 0], sizes = [1, 128], strides = [1, 1]} : vector<1x384xf32> to vector<1x128xf32>
      %25 = vector.extract_strided_slice %23 {offsets = [0, 0], sizes = [1, 128], strides = [1, 1]} : vector<1x384xf32> to vector<1x128xf32>
      %26 = arith.addf %24, %25 : vector<1x128xf32>
      %27 = arith.negf %26 : vector<1x128xf32>
      %28 = math.exp %27 : vector<1x128xf32>
      %cst_21 = arith.constant 1.000000e+00 : f32
      %29 = vector.broadcast %cst_21 : f32 to vector<1x128xf32>
      %30 = arith.addf %29, %28 : vector<1x128xf32>
      %31 = arith.divf %29, %30 : vector<1x128xf32>
      %32 = vector.extract_strided_slice %19 {offsets = [0, 128], sizes = [1, 128], strides = [1, 1]} : vector<1x384xf32> to vector<1x128xf32>
      %33 = vector.extract_strided_slice %23 {offsets = [0, 128], sizes = [1, 128], strides = [1, 1]} : vector<1x384xf32> to vector<1x128xf32>
      %34 = arith.addf %32, %33 : vector<1x128xf32>
      %35 = arith.negf %34 : vector<1x128xf32>
      %36 = math.exp %35 : vector<1x128xf32>
      %cst_22 = arith.constant 1.000000e+00 : f32
      %37 = vector.broadcast %cst_22 : f32 to vector<1x128xf32>
      %38 = arith.addf %37, %36 : vector<1x128xf32>
      %39 = arith.divf %37, %38 : vector<1x128xf32>
      %40 = vector.extract_strided_slice %19 {offsets = [0, 256], sizes = [1, 128], strides = [1, 1]} : vector<1x384xf32> to vector<1x128xf32>
      %41 = vector.extract_strided_slice %23 {offsets = [0, 256], sizes = [1, 128], strides = [1, 1]} : vector<1x384xf32> to vector<1x128xf32>
      %42 = arith.mulf %31, %41 : vector<1x128xf32>
      %43 = arith.addf %40, %42 : vector<1x128xf32>
      %44 = math.tanh %43 : vector<1x128xf32>
      %cst_23 = arith.constant 1.000000e+00 : f32
      %45 = vector.broadcast %cst_23 : f32 to vector<1x128xf32>
      %46 = arith.subf %45, %39 : vector<1x128xf32>
      %47 = arith.mulf %46, %44 : vector<1x128xf32>
      %48 = arith.mulf %39, %arg13 : vector<1x128xf32>
      %49 = arith.addf %47, %48 : vector<1x128xf32>
      %c0_24 = arith.constant 0 : index
      %c0_25 = arith.constant 0 : index
      %50 = vector.load %arg7[%c0_24, %c0_25] : memref<128x128xf32, #tpu.memory_space<vmem>>, vector<128x128xf32>
      %cst_26 = arith.constant dense<0.000000e+00> : vector<1x128xf32>
      %51 = tpu.matmul %49, %50, %cst_26 {dimension_numbers = #tpu.dot_dimension_numbers<[1], [0], [0], [1], [0, 0, 1, 1], [], []>} : vector<1x128xf32>, vector<128x128xf32>, vector<1x128xf32> -> vector<1x128xf32>
      %c0_27 = arith.constant 0 : index
      %c0_28 = arith.constant 0 : index
      %52 = vector.load %arg8[%c0_27, %c0_28] : memref<1x128xf32, #tpu.memory_space<vmem>>, vector<1x128xf32>
      %53 = arith.addf %51, %52 : vector<1x128xf32>
      %cst_29 = arith.constant dense<0xFF800000> : vector<1xf32>
      %54 = vector.multi_reduction <maximumf>, %53, %cst_29 [1] : vector<1x128xf32> to vector<1xf32>
      %55 = vector.shape_cast %54 : vector<1xf32> to vector<1x1xf32>
      %56 = vector.broadcast %55 : vector<1x1xf32> to vector<1x128xf32>
      %57 = arith.subf %53, %56 : vector<1x128xf32>
      %58 = math.exp %57 : vector<1x128xf32>
      %cst_30 = arith.constant dense<0.000000e+00> : vector<1xf32>
      %59 = vector.multi_reduction <add>, %58, %cst_30 [1] : vector<1x128xf32> to vector<1xf32>
      %60 = vector.shape_cast %59 : vector<1xf32> to vector<1x1xf32>
      %61 = vector.broadcast %60 : vector<1x1xf32> to vector<1x128xf32>
      %62 = arith.divf %58, %61 : vector<1x128xf32>
      %63 = arith.index_cast %arg12 : i32 to index
      %c0_31 = arith.constant 0 : index
      %64 = vector.load %arg9[%63, %c0_31] : memref<8x128xf32, #tpu.memory_space<vmem>>, vector<1x128xf32>
      tpu.vector_store %arg9[%63, %c0_31], %62 {strides = array<i32>} : memref<8x128xf32, #tpu.memory_space<vmem>>, vector<1x128xf32>,
      scf.yield %49 : vector<1x128xf32>
    }
    %c0_13 = arith.constant 0 : index
    %c0_14 = arith.constant 0 : index
    %17 = vector.load %arg10[%c0_13, %c0_14] : memref<1x128xf32, #tpu.memory_space<vmem>>, vector<1x128xf32>
    tpu.vector_store %arg10[%c0_13, %c0_14], %16 {strides = array<i32>} : memref<1x128xf32, #tpu.memory_space<vmem>>, vector<1x128xf32>,
    return
  }
  func.func @transform_0(%arg0: i32) -> (i32, i32) {
    %c0_i32 = arith.constant 0 : i32
    %c0_i32_0 = arith.constant 0 : i32
    return %arg0, %c0_i32 : i32, i32
  }
  func.func @transform_1(%arg0: i32) -> (i32, i32) {
    %c0_i32 = arith.constant 0 : i32
    %c0_i32_0 = arith.constant 0 : i32
    %c0_i32_1 = arith.constant 0 : i32
    return %c0_i32, %c0_i32_0 : i32, i32
  }
  func.func @transform_2(%arg0: i32) -> (i32, i32) {
    %c0_i32 = arith.constant 0 : i32
    %c0_i32_0 = arith.constant 0 : i32
    %c0_i32_1 = arith.constant 0 : i32
    return %c0_i32, %c0_i32_0 : i32, i32
  }
  func.func @transform_3(%arg0: i32) -> (i32, i32) {
    %c0_i32 = arith.constant 0 : i32
    %c0_i32_0 = arith.constant 0 : i32
    %c0_i32_1 = arith.constant 0 : i32
    return %c0_i32, %c0_i32_0 : i32, i32
  }
  func.func @transform_4(%arg0: i32) -> (i32, i32) {
    %c0_i32 = arith.constant 0 : i32
    %c0_i32_0 = arith.constant 0 : i32
    %c0_i32_1 = arith.constant 0 : i32
    return %c0_i32, %c0_i32_0 : i32, i32
  }
  func.func @transform_5(%arg0: i32) -> (i32, i32) {
    %c0_i32 = arith.constant 0 : i32
    %c0_i32_0 = arith.constant 0 : i32
    %c0_i32_1 = arith.constant 0 : i32
    return %c0_i32, %c0_i32_0 : i32, i32
  }
  func.func @transform_6(%arg0: i32) -> (i32, i32) {
    %c0_i32 = arith.constant 0 : i32
    %c0_i32_0 = arith.constant 0 : i32
    %c0_i32_1 = arith.constant 0 : i32
    return %c0_i32, %c0_i32_0 : i32, i32
  }
  func.func @transform_7(%arg0: i32) -> (i32, i32) {
    %c0_i32 = arith.constant 0 : i32
    %c0_i32_0 = arith.constant 0 : i32
    %c0_i32_1 = arith.constant 0 : i32
    return %c0_i32, %c0_i32_0 : i32, i32
  }
  func.func @transform_8(%arg0: i32) -> (i32, i32) {
    %c0_i32 = arith.constant 0 : i32
    %c0_i32_0 = arith.constant 0 : i32
    return %arg0, %c0_i32 : i32, i32
  }
  func.func @transform_9(%arg0: i32) -> (i32, i32) {
    %c0_i32 = arith.constant 0 : i32
    %c0_i32_0 = arith.constant 0 : i32
    %c0_i32_1 = arith.constant 0 : i32
    return %c0_i32, %c0_i32_0 : i32, i32
  }
}

</mosaic_0001>

<bundles_post_ra>
// kernel: tpu_custom_call.1
= control target key start
LH: loop header
LB: loop body
LE: loop exit
PB: predicated region body
PF: predicated region fallthrough
CT: control target
= control target key end

     0   :  { %15 = vsyncpa [#allocation4], 0  ;;  %s1425_s0 = inlined_call_operand.hbm [shape: f32[8,128], index: 0, kind: input, shape index: {}]   ;;  %s1426_s1 = inlined_call_operand.vmem [shape: f32[1,128], index: 1, kind: input, shape index: {}]   ;;  %s1427_s2 = inlined_call_operand.hbm [shape: f32[128,384], index: 2, kind: input, shape index: {}]   ;;  %s1428_s3 = inlined_call_operand.hbm [shape: f32[128,384], index: 3, kind: input, shape index: {}]   ;;  %s1429_s4 = inlined_call_operand.vmem [shape: f32[1,384], index: 4, kind: input, shape index: {}]   ;;  %s1430_s5 = inlined_call_operand.vmem [shape: f32[1,384], index: 5, kind: input, shape index: {}]   ;;  %s1431_s6 = inlined_call_operand.hbm [shape: f32[128,128], index: 6, kind: input, shape index: {}]   ;;  %s1432_s7 = inlined_call_operand.vmem [shape: f32[1,128], index: 7, kind: input, shape index: {}]   ;;  %s1433_s8 = inlined_call_operand.hbm [shape: f32[8,128], index: 8, kind: output, shape index: {0}]   ;;  %s1434_s9 = inlined_call_operand.hbm [shape: f32[1,128], index: 9, kind: output, shape index: {1}]  }
   0x1   :  { %16 = vsyncpa [#allocation7], 0 }
   0x2   :  { %17 = vsyncpa [#allocation10], 0 }
   0x3   :  { %18 = vsyncpa [#allocation5], 0 }
   0x4   :  { %19 = vsyncpa [#allocation13], 0  ;;  %s1199_s30 = smov [#allocation6]   ;;  %s1041_s13 = scalar_lea.hbm %s1427_s2, 6144 }
   0x5   :  { %s37_s10 = sshll.u32 %s1199_s30, 4  ;;  %p1042_p0 = scmp.ne.s32.totalorder %s1427_s2, %s1041_s13  ;;  %s38_s10 = int_to_ptr.vmem [resolvable:$true] %s37_s10 }
   0x6   :  { %p1045_p1 = scmp.lt.u32.totalorder %s1041_s13, %s1427_s2 }
   0x8   :  { %p1047_p2 = pnand %p1045_p1, %p1042_p0 }
   0xa   :  { %1050 = shalt.err (!%p1047_p2)
}
   0xb   :  { %s1051_s18 = scalar_lea.vmem %s38_s10, 6144  ;;  %p1056_p4 = scmp.lt.s32.totalorder %s38_s10, %s38_s10 }
   0xc   :  { %p1052_p3 = scmp.ne.s32.totalorder %s38_s10, %s1051_s18  ;;  %p1057_p5 = scmp.lt.s32.totalorder %s1051_s18, %s1051_s18 }
   0xe   :  { %p1058_p6 = por %p1057_p5, %p1056_p4 }
  0x10   :  { %p1059_p7 = pnand %p1058_p6, %p1052_p3 }
  0x12   :  { %1062 = shalt.err (!%p1059_p7)
}
  0x13   :  { %s1200_s19 = smov 384   ;;  %s1201_s20 = smov 24  }
  0x14   :  { %43 = dma.hbm_to_vmem [thread:$0]  %s1427_s2, 6144, %s38_s10, [#allocation7], %s1200_s19, %s1200_s19, %s1201_s20  }
  0x15   :  { %s1202_s23 = smov [#allocation3]   ;;  %s1203_s25 = smov [#allocation8]  }
  0x16   :  { %s26_s24 = sshll.u32 %s1202_s23, 4  ;;  %s49_s26 = sshll.u32 %s1203_s25, 4  ;;  %s27_s24 = int_to_ptr.vmem [resolvable:$true] %s26_s24  ;;  %s50_s26 = int_to_ptr.vmem [resolvable:$true] %s49_s26 }
  0x17   :  { %s1063_s29 = scalar_lea.hbm %s1425_s0, 128 }
  0x18   :  { %p1064_p8 = scmp.ne.s32.totalorder %s1425_s0, %s1063_s29  ;;  %p1067_p9 = scmp.lt.u32.totalorder %s1063_s29, %s1425_s0 }
  0x1a   :  { %p1069_p10 = pnand %p1067_p9, %p1064_p8 }
  0x1c   :  { %1072 = shalt.err (!%p1069_p10)
}
  0x1d   :  { %s1073_s2 = scalar_lea.vmem %s27_s24, 128  ;;  %p1078_p12 = scmp.lt.s32.totalorder %s27_s24, %s27_s24 }
  0x1e   :  { %p1074_p11 = scmp.ne.s32.totalorder %s27_s24, %s1073_s2  ;;  %p1079_p13 = scmp.lt.s32.totalorder %s1073_s2, %s1073_s2 }
  0x20   :  { %p1080_p0 = por %p1079_p13, %p1078_p12 }
  0x22   :  { %p1081_p1 = pnand %p1080_p0, %p1074_p11 }
  0x24   :  { %1084 = shalt.err (!%p1081_p1)
}
  0x25   :  { %29 = dma.hbm_to_vmem [thread:$0]  %s1425_s0, 128, %s27_s24, [#allocation4]  }
  0x26   :  { %s1085_s17 = scalar_lea.hbm %s1428_s3, 6144 }
  0x27   :  { %p1086_p2 = scmp.ne.s32.totalorder %s1428_s3, %s1085_s17  ;;  %p1089_p3 = scmp.lt.u32.totalorder %s1085_s17, %s1428_s3 }
  0x29   :  { %p1091_p4 = pnand %p1089_p3, %p1086_p2 }
  0x2b   :  { %1094 = shalt.err (!%p1091_p4)
}
  0x2c   :  { %s1095_s25 = scalar_lea.vmem %s50_s26, 6144  ;;  %p1100_p6 = scmp.lt.s32.totalorder %s50_s26, %s50_s26 }
  0x2d   :  { %p1096_p5 = scmp.ne.s32.totalorder %s50_s26, %s1095_s25  ;;  %p1101_p7 = scmp.lt.s32.totalorder %s1095_s25, %s1095_s25 }
  0x2f   :  { %p1102_p8 = por %p1101_p7, %p1100_p6 }
  0x31   :  { %p1103_p9 = pnand %p1102_p8, %p1096_p5 }
  0x33   :  { %1106 = shalt.err (!%p1103_p9)
}
  0x34   :  { %55 = dma.hbm_to_vmem [thread:$0]  %s1428_s3, 6144, %s50_s26, [#allocation7], %s1200_s19, %s1200_s19, %s1201_s20  }
  0x35   :  { %s1204_s27 = smov [#allocation9]   ;;  %s1107_s11 = scalar_lea.hbm %s1431_s6, 2048 }
  0x36   :  { %s65_s28 = sshll.u32 %s1204_s27, 4  ;;  %p1108_p10 = scmp.ne.s32.totalorder %s1431_s6, %s1107_s11  ;;  %s66_s28 = int_to_ptr.vmem [resolvable:$true] %s65_s28 }
  0x37   :  { %p1111_p11 = scmp.lt.u32.totalorder %s1107_s11, %s1431_s6 }
  0x39   :  { %p1113_p12 = pnand %p1111_p11, %p1108_p10 }
  0x3b   :  { %1116 = shalt.err (!%p1113_p12)
}
  0x3c   :  { %s1117_s14 = scalar_lea.vmem %s66_s28, 2048  ;;  %p1122_p0 = scmp.lt.s32.totalorder %s66_s28, %s66_s28 }
  0x3d   :  { %p1118_p13 = scmp.ne.s32.totalorder %s66_s28, %s1117_s14  ;;  %p1123_p1 = scmp.lt.s32.totalorder %s1117_s14, %s1117_s14 }
  0x3f   :  { %p1124_p2 = por %p1123_p1, %p1122_p0 }
  0x41   :  { %p1125_p3 = pnand %p1124_p2, %p1118_p13 }
  0x43   :  { %1128 = shalt.err (!%p1125_p3)
}
  0x44   :  { %s1205_s3 = smov 128   ;;  %s1206_s19 = smov 8  }
  0x45   :  { %71 = dma.hbm_to_vmem [thread:$0]  %s1431_s6, 2048, %s66_s28, [#allocation10], %s1205_s3, %s1205_s3, %s1206_s19  }
  0x46   :  { %1181 = dma.done.wait [#allocation4], 128  }
  0x47   :  { %1182 = vsyncadd [#allocation4], 4294967168 }
  0x48   :  { %1183 = dma.done.wait [#allocation7], 12288  }
  0x49   :  { %1184 = vsyncadd [#allocation7], 4294955008 }
  0x4a   :  { %1185 = dma.done.wait [#allocation10], 2048  }
  0x4b   :  { %1186 = vsyncadd [#allocation10], 4294965248  ;;  %v1207_v0 = vmov 0.0|0.0   ;;  %v1208_v1 = vmov 0.0   ;;  %vm1209_vm0 = vmmov 0   ;;  %v94_v3 = vld [vmem:[#allocation6 + $0x8] sm:$0xff] }
  0x4c   :  { %891 = vmatprep.subr.bf16.mxu1 %v1207_v0  ;;  %222 = vmatprep.mubr.f32.mxu0 %v1208_v1  ;;  %v90_v2 = vld [vmem:[%s1426_s1] sm:$0x1]  ;;  %v96_v7 = vld [vmem:[#allocation6 + $0x18] sm:$0xff]  ;;  %v95_v8 = vld [vmem:[#allocation6 + $0x10] sm:$0xff] }
  0x4d   :  { %786 = vmatprep.mubr.msk.f32.mxu1 %vm1209_vm0, %v1208_v1  ;;  %v97_v4 = vld [vmem:[#allocation6 + $0x20] sm:$0xff]  ;;  %91 = vst [vmem:[#allocation12] sm:$0x1] %v90_v2  ;;  %v98_v10 = vld [vmem:[#allocation6 + $0x28] sm:$0xff]  ;;  %v100_v11 = vld [vmem:[#allocation6 + $0x38] sm:$0xff] }
  0x4e   :  { %v859_v5 = vpack.c.bf16 %v97_v4, %v94_v3  ;;  %v93_v6 = vld [vmem:[#allocation6] sm:$0xff]  ;;  %v103_v12 = vld [vmem:[#allocation6 + $0x50] sm:$0xff]  ;;  %v892_v13 = vpack.c.bf16 %v98_v10, %v95_v8  ;;  %v102_v16 = vld [vmem:[#allocation6 + $0x48] sm:$0xff] }
  0x4f   :  { %v861_v9 = vpack.c.bf16 %v96_v7, %v93_v6  ;;  %v863_v14 = vpack.c.bf16 %v103_v12, %v100_v11  ;;  %v99_v15 = vld [vmem:[#allocation6 + $0x30] sm:$0xff]  ;;  %v101_v17 = vld [vmem:[#allocation6 + $0x40] sm:$0xff]  ;;  %v104_v19 = vld [vmem:[#allocation6 + $0x58] sm:$0xff] }
  0x50   :  { %860 = vmatprep.subr.bf16.mxu0 %v859_v5  ;;  %v865_v18 = vpack.c.bf16 %v102_v16, %v99_v15  ;;  %v106_v20 = vld [vmem:[#allocation6 + $0x68] sm:$0xff]  ;;  %v109_v21 = vld [vmem:[#allocation6 + $0x80] sm:$0xff]  ;;  %893 = vmatpush3.bf16.msra.mxu1 %v892_v13  ;;  %v895_v22 = vpack.c.bf16 %v104_v19, %v101_v17  ;;  %v108_v25 = vld [vmem:[#allocation6 + $0x78] sm:$0xff] }
  0x51   :  { %862 = vmatpush1.bf16.msra.mxu0 %v861_v9  ;;  %v867_v23 = vpack.c.bf16 %v109_v21, %v106_v20  ;;  %v105_v24 = vld [vmem:[#allocation6 + $0x60] sm:$0xff]  ;;  %v107_v26 = vld [vmem:[#allocation6 + $0x70] sm:$0xff]  ;;  %894 = vmatprep.subr.bf16.mxu1 %v1207_v0  ;;  %v110_v27 = vld [vmem:[#allocation6 + $0x88] sm:$0xff] }
  0x52   :  { %864 = vmatprep.subr.bf16.mxu0 %v863_v14  ;;  %v112_v28 = vld [vmem:[#allocation6 + $0x98] sm:$0xff]  ;;  %v115_v29 = vld [vmem:[#allocation6 + $0xb0] sm:$0xff]  ;;  %v869_v31 = vpack.c.bf16 %v108_v25, %v105_v24  ;;  %v898_v32 = vpack.c.bf16 %v110_v27, %v107_v26  ;;  %v114_v35 = vld [vmem:[#allocation6 + $0xa8] sm:$0xff]  ;;  %v143_v14 = vlaneseq }
  0x53   :  { %v871_v33 = vpack.c.bf16 %v115_v29, %v112_v28  ;;  %v111_v34 = vld [vmem:[#allocation6 + $0x90] sm:$0xff]  ;;  %v113_v36 = vld [vmem:[#allocation6 + $0xa0] sm:$0xff]  ;;  %v116_v37 = vld [vmem:[#allocation6 + $0xb8] sm:$0xff] }
  0x54   :  { %v1324_v30 = vld [vmem:[#allocation12] sm:$0x1]   ;;  %896 = vmatpush3.bf16.msra.mxu1 %v895_v22  ;;  %v121_v39 = vld [vmem:[#allocation6 + $0xe0] sm:$0xff]  ;;  %v873_v40 = vpack.c.bf16 %v114_v35, %v111_v34  ;;  %v901_v41 = vpack.c.bf16 %v116_v37, %v113_v36  ;;  %v120_v44 = vld [vmem:[#allocation6 + $0xd8] sm:$0xff]  ;;  %v1332_v15 = vshrl.u32 %v143_v14, 7 }
  0x55   :  { %866 = vmatpush1.bf16.msra.mxu0 %v865_v18  ;;  %897 = vmatprep.subr.bf16.mxu1 %v1207_v0  ;;  %v118_v38 = vld [vmem:[#allocation6 + $0xc8] sm:$0xff]  ;;  %v117_v43 = vld [vmem:[#allocation6 + $0xc0] sm:$0xff]  ;;  %v119_v45 = vld [vmem:[#allocation6 + $0xd0] sm:$0xff] }
  0x56   :  { %868 = vmatprep.subr.bf16.mxu0 %v867_v23  ;;  %v875_v42 = vpack.c.bf16 %v121_v39, %v118_v38  ;;  %v122_v46 = vld [vmem:[#allocation6 + $0xe8] sm:$0xff]  ;;  %v124_v47 = vld [vmem:[#allocation6 + $0xf8] sm:$0xff]  ;;  %v127_v48 = vld [vmem:[#allocation6 + $0x110] sm:$0xff]  ;;  %v877_v49 = vpack.c.bf16 %v120_v44, %v117_v43  ;;  %v145_v16 = vsub.s32 0, %v1332_v15  ;;  %v153_v18 = vsub.s32 2, %v1332_v15 }
  0x57   :  { %v904_v50 = vpack.c.bf16 %v122_v46, %v119_v45  ;;  %v879_v51 = vpack.c.bf16 %v127_v48, %v124_v47  ;;  %v123_v52 = vld [vmem:[#allocation6 + $0xf0] sm:$0xff]  ;;  %v126_v53 = vld [vmem:[#allocation6 + $0x108] sm:$0xff]  ;;  %v125_v54 = vld [vmem:[#allocation6 + $0x100] sm:$0xff]  ;;  %v149_v19 = vsub.s32 1, %v1332_v15 }
  0x58   :  { %899 = vmatpush3.bf16.msra.mxu1 %v898_v32  ;;  %v128_v55 = vld [vmem:[#allocation6 + $0x118] sm:$0xff]  ;;  %v130_v56 = vld [vmem:[#allocation6 + $0x128] sm:$0xff]  ;;  %v133_v57 = vld [vmem:[#allocation6 + $0x140] sm:$0xff]  ;;  %v881_v58 = vpack.c.bf16 %v126_v53, %v123_v52 }
  0x59   :  { %870 = vmatpush1.bf16.msra.mxu0 %v869_v31  ;;  %900 = vmatprep.subr.bf16.mxu1 %v1207_v0  ;;  %v907_v59 = vpack.c.bf16 %v128_v55, %v125_v54  ;;  %v883_v60 = vpack.c.bf16 %v133_v57, %v130_v56  ;;  %v129_v61 = vld [vmem:[#allocation6 + $0x120] sm:$0xff]  ;;  %v132_v62 = vld [vmem:[#allocation6 + $0x138] sm:$0xff]  ;;  %v131_v63 = vld [vmem:[#allocation6 + $0x130] sm:$0xff] }
  0x5a   :  { %872 = vmatprep.subr.bf16.mxu0 %v871_v33  ;;  %v134_v1 = vld [vmem:[#allocation6 + $0x148] sm:$0xff]  ;;  %v136_v2 = vld [vmem:[#allocation6 + $0x158] sm:$0xff]  ;;  %v139_v3 = vld [vmem:[#allocation6 + $0x170] sm:$0xff]  ;;  %v885_v4 = vpack.c.bf16 %v132_v62, %v129_v61 }
  0x5b   :  { %v910_v5 = vpack.c.bf16 %v134_v1, %v131_v63  ;;  %v887_v6 = vpack.c.bf16 %v139_v3, %v136_v2  ;;  %v135_v7 = vld [vmem:[#allocation6 + $0x150] sm:$0xff]  ;;  %v138_v8 = vld [vmem:[#allocation6 + $0x168] sm:$0xff]  ;;  %v137_v9 = vld [vmem:[#allocation6 + $0x160] sm:$0xff] }
  0x5c   :  { %902 = vmatpush3.bf16.msra.mxu1 %v901_v41  ;;  %v140_v10 = vld [vmem:[#allocation6 + $0x178] sm:$0xff]  ;;  %v889_v11 = vpack.c.bf16 %v138_v8, %v135_v7  ;;  %v141_v17 = vld [vmem:[%s1429_s4] sm:$0x7]  ;;  %s1349_s4 = smov 0  }
  0x5d   :  { %874 = vmatpush1.bf16.msra.mxu0 %v873_v40  ;;  %903 = vmatprep.subr.bf16.mxu1 %v1207_v0  ;;  %v913_v12 = vpack.c.bf16 %v140_v10, %v137_v9  ;;  %v92_v13 = vld [vmem:[#allocation3] sm:$0xff]  ;;  %v154_v20 = vrot.slane %v141_v17, %v153_v18  ;;  %v150_v21 = vrot.slane %v141_v17, %v149_v19 }
  0x5e   :  { %876 = vmatprep.subr.bf16.mxu0 %v875_v42 }
  0x60   :  { %905 = vmatpush3.bf16.msra.mxu1 %v904_v50 }
  0x61   :  { %878 = vmatpush1.bf16.msra.mxu0 %v877_v49  ;;  %906 = vmatprep.subr.bf16.mxu1 %v1207_v0 }
  0x62   :  { %880 = vmatprep.subr.bf16.mxu0 %v879_v51 }
  0x64   :  { %908 = vmatpush3.bf16.msra.mxu1 %v907_v59 }
  0x65   :  { %882 = vmatpush1.bf16.msra.mxu0 %v881_v58  ;;  %909 = vmatprep.subr.bf16.mxu1 %v1207_v0 }
  0x66   :  { %884 = vmatprep.subr.bf16.mxu0 %v883_v60 }
  0x68   :  { %911 = vmatpush3.bf16.msra.mxu1 %v910_v5 }
  0x69   :  { %886 = vmatpush1.bf16.msra.mxu0 %v885_v4  ;;  %912 = vmatprep.subr.bf16.mxu1 %v1207_v0  ;;  %v146_v0 = vrot.slane %v141_v17, %v145_v16 }
  0x6a   :  { %888 = vmatprep.subr.bf16.mxu0 %v887_v6 }
  0x6c   :  { %914 = vmatpush3.bf16.msra.mxu1 %v913_v12 }
  0x6d   :  { %890 = vmatpush1.bf16.msra.mxu0 %v889_v11 }
  0x6f   :  { %787 = vmatmul.mubr.f32.vlgmr.msra.gmra.mrb[0].mxu1 %v92_v13 }
  0x70   :  { %223 = vmatmul.mubr.f32.vlgmr.msra.gmra.mrb[0].mxu0 %v92_v13 }
 0x142   :  { %v295_v24 = vpop.f32.mrb[0].mxu1 }
 0x143   :  { %v224_v22 = vpop.f32.mrb[0].mxu0  ;;  %v296_v26 = vadd.f32 %v295_v24, %v154_v20  ;;  %v788_v28 = vpop.f32.mrb[1].mxu1 }
 0x144   :  { %v225_v23 = vadd.f32 %v224_v22, %v146_v0  ;;  %v226_v25 = vpop.f32.mrb[1].mxu0 }
 0x145   :  { %v227_v27 = vadd.f32 %v226_v25, %v150_v21  ;;  %301 = vst [vmem:[#allocation2 + $0x10] sm:$0xff] %v296_v26 }
 0x146   :  { %299 = vst [vmem:[#allocation2] sm:$0xff] %v225_v23 }
 0x147   :  { %300 = vst [vmem:[#allocation2 + $0x8] sm:$0xff] %v227_v27 }
 0x148 LB: > { %v324_v29 = vld [vmem:[#allocation8 + $0x8] sm:$0xff]  ;;  %v327_v31 = vld [vmem:[#allocation8 + $0x20] sm:$0xff]  ;;  %v326_v34 = vld [vmem:[#allocation8 + $0x18] sm:$0xff]  ;;  %v1210_v37 = vmov 0.0|0.0   ;;  %v1211_v38 = vmov 0.0   ;;  %vm1212_vm1 = vmmov 0   ;;  %s1197_s4 = sphi %s1349_s4, %s310_s4   ;;  %v1193_v30 = vphi %v1324_v30, %v1435_v30  }
 0x149   : > { %v323_v32 = vld [vmem:[#allocation8] sm:$0xff]  ;;  %v915_v33 = vpack.c.bf16 %v327_v31, %v324_v29  ;;  %v330_v35 = vld [vmem:[#allocation8 + $0x38] sm:$0xff]  ;;  %v333_v36 = vld [vmem:[#allocation8 + $0x50] sm:$0xff]  ;;  %947 = vmatprep.subr.bf16.mxu1 %v1210_v37  ;;  %452 = vmatprep.mubr.f32.mxu0 %v1211_v38  ;;  %s314_s17 = sshra.s32 %s1197_s4, 3  ;;  %s317_s21 = sand.u32 7, %s1197_s4  ;;  %vm642_vm2 = vcmask 1040384  }
 0x14a   : > { %v917_v39 = vpack.c.bf16 %v326_v34, %v323_v32  ;;  %v919_v40 = vpack.c.bf16 %v333_v36, %v330_v35  ;;  %v329_v41 = vld [vmem:[#allocation8 + $0x30] sm:$0xff]  ;;  %v332_v42 = vld [vmem:[#allocation8 + $0x48] sm:$0xff]  ;;  %821 = vmatprep.mubr.msk.f32.mxu1 %vm1212_vm1, %v1211_v38  ;;  %v339_v44 = vld [vmem:[#allocation8 + $0x80] sm:$0xff]  ;;  %s700_s18 = smul.u32 24, %s314_s17  ;;  %s654_s28 = scalar_lea.vmem [#allocation11], %s1197_s4 }
 0x14b   : > { %v336_v43 = vld [vmem:[#allocation8 + $0x68] sm:$0xff]  ;;  %916 = vmatprep.subr.bf16.mxu0 %v915_v33  ;;  %v921_v45 = vpack.c.bf16 %v332_v42, %v329_v41  ;;  %v335_v47 = vld [vmem:[#allocation8 + $0x60] sm:$0xff]  ;;  %v338_v48 = vld [vmem:[#allocation8 + $0x78] sm:$0xff]  ;;  %s310_s4 = sadd.s32 1, %s1197_s4  }
 0x14c   : > { %918 = vmatpush1.bf16.msra.mxu0 %v917_v39  ;;  %v923_v46 = vpack.c.bf16 %v339_v44, %v336_v43  ;;  %v342_v49 = vld [vmem:[#allocation8 + $0x98] sm:$0xff]  ;;  %v345_v50 = vld [vmem:[#allocation8 + $0xb0] sm:$0xff]  ;;  %v925_v51 = vpack.c.bf16 %v338_v48, %v335_v47  ;;  %v344_v54 = vld [vmem:[#allocation8 + $0xa8] sm:$0xff]  ;;  %s320_s22 = sadd.s32 %s700_s18, %s317_s21  ;;  %p309_p4 = scmp.ge.s32.totalorder %s310_s4, 1 }
 0x14d   : > { %920 = vmatprep.subr.bf16.mxu0 %v919_v40  ;;  %v927_v52 = vpack.c.bf16 %v345_v50, %v342_v49  ;;  %v341_v53 = vld [vmem:[#allocation8 + $0x90] sm:$0xff]  ;;  %v348_v55 = vld [vmem:[#allocation8 + $0xc8] sm:$0xff]  ;;  %v351_v56 = vld [vmem:[#allocation8 + $0xe0] sm:$0xff]  ;;  %s321_s0 = scalar_lea.vmem [#allocation2], %s320_s22  ;;  %s1213_s29 = smov (%p309_p4), [#allocation11]  }
 0x14e   : > { %v325_v57 = vld [vmem:[#allocation8 + $0x10] sm:$0xff]  ;;  %v328_v58 = vld [vmem:[#allocation8 + $0x28] sm:$0xff]  ;;  %v331_v60 = vld [vmem:[#allocation8 + $0x40] sm:$0xff]  ;;  %v929_v62 = vpack.c.bf16 %v344_v54, %v341_v53  ;;  %v931_v63 = vpack.c.bf16 %v351_v56, %v348_v55  ;;  %s663_s30 = sshll.u32 (%p309_p4), %s1213_s29, 4  ;;  %s1214_s11 = smov (%p309_p4), [#allocation12]   ;;  %s664_s30 = int_to_ptr.vmem [resolvable:$true] %s663_s30 }
 0x14f   : > { %v948_v59 = vpack.c.bf16 %v328_v58, %v325_v57  ;;  %v334_v61 = vld [vmem:[#allocation8 + $0x58] sm:$0xff]  ;;  %v347_v1 = vld [vmem:[#allocation8 + $0xc0] sm:$0xff]  ;;  %v357_v5 = vld [vmem:[#allocation8 + $0x110] sm:$0xff]  ;;  %s673_s12 = sshll.u32 (%p309_p4), %s1214_s11, 4  ;;  %s1129_s13 = scalar_lea.vmem (%p309_p4), %s664_s30, 128  ;;  %s674_s12 = int_to_ptr.vmem [resolvable:$true] %s673_s12 }
 0x150   : > { %922 = vmatpush1.bf16.msra.mxu0 %v921_v45  ;;  %v350_v2 = vld [vmem:[#allocation8 + $0xd8] sm:$0xff]  ;;  %v951_v4 = vpack.c.bf16 %v334_v61, %v331_v60  ;;  %v337_v6 = vld [vmem:[#allocation8 + $0x70] sm:$0xff]  ;;  %v340_v7 = vld [vmem:[#allocation8 + $0x88] sm:$0xff]  ;;  %p1130_p5 = scmp.ne.s32.totalorder (%p309_p4), %s664_s30, %s1129_s13  ;;  %p1134_p6 = scmp.lt.s32.totalorder (%p309_p4), %s664_s30, %s664_s30 }
 0x151   : > { %924 = vmatprep.subr.bf16.mxu0 %v923_v46  ;;  %v354_v3 = vld [vmem:[#allocation8 + $0xf8] sm:$0xff]  ;;  %949 = vmatpush3.bf16.msra.mxu1 %v948_v59  ;;  %v933_v8 = vpack.c.bf16 %v350_v2, %v347_v1  ;;  %v353_v10 = vld [vmem:[#allocation8 + $0xf0] sm:$0xff]  ;;  %v356_v11 = vld [vmem:[#allocation8 + $0x108] sm:$0xff]  ;;  %v954_v13 = vpack.c.bf16 %v340_v7, %v337_v6  ;;  %p1135_p7 = scmp.lt.s32.totalorder (%p309_p4), %s1129_s13, %s1129_s13 }
 0x152   : > { %950 = vmatprep.subr.bf16.mxu1 %v1210_v37  ;;  %v935_v9 = vpack.c.bf16 %v357_v5, %v354_v3  ;;  %v360_v12 = vld [vmem:[#allocation8 + $0x128] sm:$0xff]  ;;  %v363_v14 = vld [vmem:[#allocation8 + $0x140] sm:$0xff]  ;;  %v346_v0 = vld [vmem:[#allocation8 + $0xb8] sm:$0xff]  ;;  %v937_v20 = vpack.c.bf16 %v356_v11, %v353_v10 }
 0x153   : > { %v343_v17 = vld [vmem:[#allocation8 + $0xa0] sm:$0xff]  ;;  %v939_v21 = vpack.c.bf16 %v363_v14, %v360_v12  ;;  %v362_v23 = vld [vmem:[#allocation8 + $0x138] sm:$0xff]  ;;  %v369_v26 = vld [vmem:[#allocation8 + $0x170] sm:$0xff]  ;;  %p1136_p8 = por (%p309_p4), %p1135_p7, %p1134_p6 }
 0x154   : > { %926 = vmatpush1.bf16.msra.mxu0 %v925_v51  ;;  %v359_v22 = vld [vmem:[#allocation8 + $0x120] sm:$0xff]  ;;  %v366_v24 = vld [vmem:[#allocation8 + $0x158] sm:$0xff]  ;;  %v957_v25 = vpack.c.bf16 %v346_v0, %v343_v17  ;;  %v349_v27 = vld [vmem:[#allocation8 + $0xd0] sm:$0xff] }
 0x155   : > { %928 = vmatprep.subr.bf16.mxu0 %v927_v52  ;;  %952 = vmatpush3.bf16.msra.mxu1 %v951_v4  ;;  %v352_v28 = vld [vmem:[#allocation8 + $0xe8] sm:$0xff]  ;;  %v941_v29 = vpack.c.bf16 %v362_v23, %v359_v22  ;;  %v943_v31 = vpack.c.bf16 %v369_v26, %v366_v24  ;;  %v365_v32 = vld [vmem:[#allocation8 + $0x150] sm:$0xff]  ;;  %v355_v35 = vld [vmem:[#allocation8 + $0x100] sm:$0xff]  ;;  %p1137_p9 = pnand (%p309_p4), %p1136_p8, %p1130_p5 }
 0x156   : > { %953 = vmatprep.subr.bf16.mxu1 %v1210_v37  ;;  %v368_v33 = vld [vmem:[#allocation8 + $0x168] sm:$0xff]  ;;  %v960_v34 = vpack.c.bf16 %v352_v28, %v349_v27  ;;  %v358_v36 = vld [vmem:[#allocation8 + $0x118] sm:$0xff]  ;;  %v361_v41 = vld [vmem:[#allocation8 + $0x130] sm:$0xff] }
 0x157   : > { %v945_v39 = vpack.c.bf16 %v368_v33, %v365_v32  ;;  %v963_v40 = vpack.c.bf16 %v358_v36, %v355_v35  ;;  %v364_v42 = vld [vmem:[#allocation8 + $0x148] sm:$0xff]  ;;  %v367_v44 = vld [vmem:[#allocation8 + $0x160] sm:$0xff]  ;;  %v370_v45 = vld [vmem:[#allocation8 + $0x178] sm:$0xff] }
 0x158   : > { %930 = vmatpush1.bf16.msra.mxu0 %v929_v62  ;;  %v966_v43 = vpack.c.bf16 %v364_v42, %v361_v41  ;;  %v969_v46 = vpack.c.bf16 %v370_v45, %v367_v44  ;;  %v555_v47 = vld [vmem:[#allocation9] sm:$0xff]  ;;  %v556_v48 = vld [vmem:[#allocation9 + $0x8] sm:$0xff]  ;;  %v557_v50 = vld [vmem:[#allocation9 + $0x10] sm:$0xff] }
 0x159   : > { %932 = vmatprep.subr.bf16.mxu0 %v931_v63  ;;  %955 = vmatpush3.bf16.msra.mxu1 %v954_v13  ;;  %v972_v49 = vpack.c.bf16 %v556_v48, %v555_v47  ;;  %v558_v51 = vld [vmem:[#allocation9 + $0x18] sm:$0xff]  ;;  %v560_v53 = vld [vmem:[#allocation9 + $0x28] sm:$0xff]  ;;  %v561_v55 = vld [vmem:[#allocation9 + $0x30] sm:$0xff] }
 0x15a   : > { %956 = vmatprep.subr.bf16.mxu1 %v1210_v37  ;;  %v975_v52 = vpack.c.bf16 %v558_v51, %v557_v50  ;;  %v562_v56 = vld [vmem:[#allocation9 + $0x38] sm:$0xff]  ;;  %v563_v58 = vld [vmem:[#allocation9 + $0x40] sm:$0xff]  ;;  %v564_v59 = vld [vmem:[#allocation9 + $0x48] sm:$0xff] }
 0x15b   : > { %v981_v57 = vpack.c.bf16 %v562_v56, %v561_v55  ;;  %v984_v60 = vpack.c.bf16 %v564_v59, %v563_v58  ;;  %v565_v61 = vld [vmem:[#allocation9 + $0x50] sm:$0xff]  ;;  %v566_v62 = vld [vmem:[#allocation9 + $0x58] sm:$0xff]  ;;  %v567_v1 = vld [vmem:[#allocation9 + $0x60] sm:$0xff] }
 0x15c   : > { %934 = vmatpush1.bf16.msra.mxu0 %v933_v8  ;;  %v987_v63 = vpack.c.bf16 %v566_v62, %v565_v61  ;;  %v568_v2 = vld [vmem:[#allocation9 + $0x68] sm:$0xff]  ;;  %v569_v4 = vld [vmem:[#allocation9 + $0x70] sm:$0xff]  ;;  %v570_v5 = vld [vmem:[#allocation9 + $0x78] sm:$0xff] }
 0x15d   : > { %936 = vmatprep.subr.bf16.mxu0 %v935_v9  ;;  %958 = vmatpush3.bf16.msra.mxu1 %v957_v25  ;;  %v990_v3 = vpack.c.bf16 %v568_v2, %v567_v1  ;;  %v993_v6 = vpack.c.bf16 %v570_v5, %v569_v4  ;;  %v371_v7 = vld [vmem:[%s1430_s5] sm:$0x7] }
 0x15e   : > { %959 = vmatprep.subr.bf16.mxu1 %v1210_v37  ;;  %v376_v8 = vrot.slane %v371_v7, %v145_v16  ;;  %v380_v9 = vrot.slane %v371_v7, %v149_v19  ;;  %v322_v10 = vld [vmem:[%s321_s0] ss:$8 sm:$0x7]  ;;  %v384_v26 = vrot.slane %v371_v7, %v153_v18 }
 0x15f   : > { %v537_v14 = vrot.slane %v322_v10, 1 }
 0x160   : > { %938 = vmatpush1.bf16.msra.mxu0 %v937_v20 }
 0x161   : > { %940 = vmatprep.subr.bf16.mxu0 %v939_v21  ;;  %961 = vmatpush3.bf16.msra.mxu1 %v960_v34 }
 0x162   : > { %962 = vmatprep.subr.bf16.mxu1 %v1210_v37 }
 0x164   : > { %942 = vmatpush1.bf16.msra.mxu0 %v941_v29 }
 0x165   : > { %944 = vmatprep.subr.bf16.mxu0 %v943_v31  ;;  %964 = vmatpush3.bf16.msra.mxu1 %v963_v40  ;;  %v547_v31 = vrot.slane %v322_v10, 2 }
 0x166   : > { %965 = vmatprep.subr.bf16.mxu1 %v1210_v37 }
 0x168   : > { %946 = vmatpush1.bf16.msra.mxu0 %v945_v39 }
 0x169   : > { %971 = vmatprep.subr.bf16.mxu0 %v1210_v37  ;;  %967 = vmatpush3.bf16.msra.mxu1 %v966_v43  ;;  %v571_v43 = vld [vmem:[%s1432_s7] sm:$0x1] }
 0x16a   : > { %968 = vmatprep.subr.bf16.mxu1 %v1210_v37 }
 0x16b   : > { %453 = vmatmul.mubr.f32.vlgmr.msra.gmra.mrb[0].mxu0 %v1193_v30 }
 0x16c   : > { %856 = vmatprep.mubr.msk.f32.mxu0 %vm1212_vm1, %v1211_v38  ;;  %973 = vmatpush3.bf16.msra.mxu0 %v972_v49  ;;  %v559_v38 = vld [vmem:[#allocation9 + $0x20] sm:$0xff] }
 0x16d   : > { %970 = vmatpush3.bf16.msra.mxu1 %v969_v46  ;;  %974 = vmatprep.subr.bf16.mxu0 %v1210_v37  ;;  %v978_v54 = vpack.c.bf16 %v560_v53, %v559_v38 }
 0x170   : > { %822 = vmatmul.mubr.f32.vlgmr.msra.gmra.mrb[0].mxu1 %v1193_v30  ;;  %976 = vmatpush3.bf16.msra.mxu0 %v975_v52 }
 0x171   : > { %977 = vmatprep.subr.bf16.mxu0 %v1210_v37 }
 0x174   : > { %979 = vmatpush3.bf16.msra.mxu0 %v978_v54 }
 0x175   : > { %980 = vmatprep.subr.bf16.mxu0 %v1210_v37 }
 0x178   : > { %982 = vmatpush3.bf16.msra.mxu0 %v981_v57 }
 0x179   : > { %983 = vmatprep.subr.bf16.mxu0 %v1210_v37 }
 0x17c   : > { %985 = vmatpush3.bf16.msra.mxu0 %v984_v60 }
 0x17d   : > { %986 = vmatprep.subr.bf16.mxu0 %v1210_v37 }
 0x180   : > { %988 = vmatpush3.bf16.msra.mxu0 %v987_v63 }
 0x181   : > { %989 = vmatprep.subr.bf16.mxu0 %v1210_v37 }
 0x184   : > { %991 = vmatpush3.bf16.msra.mxu0 %v990_v3 }
 0x185   : > { %992 = vmatprep.subr.bf16.mxu0 %v1210_v37 }
 0x188   : > { %994 = vmatpush3.bf16.msra.mxu0 %v993_v6 }
 0x23e   : > { %v454_v11 = vpop.f32.mrb[0].mxu0 }
 0x23f   : > { %v455_v12 = vadd.f32 %v454_v11, %v376_v8  ;;  %v456_v37 = vpop.f32.mrb[1].mxu0 }
 0x240   : > { %v457_v13 = vadd.f32 %v456_v37, %v380_v9 }
 0x241   : > { %v529_v17 = vadd.f32 %v455_v12, %v322_v10 }
 0x242   : > { %v539_v20 = vadd.f32 %v537_v14, %v457_v13 }
 0x243   : > { %v701_v0 = vmul.f32 -1.442695, %v529_v17  ;;  %v525_v21 = vpop.f32.mrb[0].mxu1 }
 0x244   : > { %v702_v22 = vmul.f32 -1.442695, %v539_v20  ;;  %v823_v23 = vpop.f32.mrb[1].mxu1  ;;  %v526_v29 = vadd.f32 %v525_v21, %v384_v26 }
 0x245   : > { %1027 = vpow2.f32 %v701_v0 }
 0x246   : > { %1029 = vpow2.f32 %v702_v22 }
 0x24f   : > { %v1028_v24 = vpop.eup %1027 }
 0x250   : > { %v533_v25 = vadd.f32 1.0, %v1028_v24  ;;  %v1030_v27 = vpop.eup %1029 }
 0x251   : > { %v543_v28 = vadd.f32 1.0, %v1030_v27 }
 0x252   : > { %1031 = vrcp.f32 %v533_v25 }
 0x253   : > { %1033 = vrcp.f32 %v543_v28 }
 0x25c   : > { %v1032_v32 = vpop.eup %1031 }
 0x25d   : > { %v546_v33 = vmul.f32 %v1032_v32, %v526_v29  ;;  %v1034_v35 = vpop.eup %1033 }
 0x25e   : > { %v551_v36 = vsub.f32 1.0, %v1034_v35  ;;  %v553_v41 = vmul.f32 %v1193_v30, %v1034_v35 }
 0x25f   : > { %v549_v34 = vadd.f32 %v547_v31, %v546_v33 }
 0x261   : > { %1035 = vtanh.f32 %v549_v34 }
 0x26b   : > { %v1036_v39 = vpop.eup %1035 }
 0x26c   : > { %v552_v40 = vmul.f32 %v1036_v39, %v551_v36 }
 0x26e   : > { %v554_v42 = vadd.f32 %v553_v41, %v552_v40  }
 0x270   : > { %857 = vmatmul.mubr.f32.vlgmr.msra.gmra.mrb[2].mxu0 %v554_v42  ;;  %656 = vst [vmem:[#allocation12] sm:$0x1] (%p309_p4), %v554_v42 }
 0x343   : > { %v638_v44 = vpop.f32.mrb[2].mxu0 }
 0x344   : > { %v639_v45 = vadd.f32 %v638_v44, %v571_v43  ;;  %v858_v46 = vpop.f32.mrb[3].mxu0 }
 0x346   : > { %v643_v47 = vsel %vm642_vm2, %v639_v45, -inf }
 0x347   : > { %644 = vmax.xlane.f32.xlu0 %v643_v47 }
 0x3d4   : > { %v645_v48 = vpop.xlane.xlu0 %644 }
 0x3d5   : > { %v646_v49 = vsub.f32 %v639_v45, %v645_v48 }
 0x3d7   : > { %v647_v50 = vmul.f32 1.442695, %v646_v49 }
 0x3d9   : > { %1037 = vpow2.f32 %v647_v50 }
 0x3e3   : > { %v1038_v51 = vpop.eup %1037 }
 0x3e4   : > { %v649_v52 = vsel %vm642_vm2, %v1038_v51, 0.0 }
 0x3e5   : > { %650 = vadd.xlane.f32.xlu0 %v649_v52 }
 0x472   : > { %v651_v30 = vpop.xlane.xlu0 %650 }
 0x473   : > { %1039 = vrcp.f32 %v651_v30  ;;  %v1435_v30 = vmov %v554_v42 }
 0x47a   :  { %312 = sbr.rel (!%p309_p4) target bundleno = 328 (0x148), region = 89 }
 0x47d   : > { %v1040_v38 = vpop.eup %1039 }
 0x47e   : > { %v653_v53 = vmul.f32 %v1040_v38, %v1038_v51 }
 0x480   : > { %655 = vst [vmem:[%s654_s28] sm:$0x1] %v653_v53 }
 0x481   :  { %1140 = shalt.err (!%p1137_p9)
}
 0x482   :  { %s1141_s14 = scalar_lea.hbm %s1433_s8, 128 }
 0x483   :  { %p1142_p10 = scmp.ne.s32.totalorder %s1433_s8, %s1141_s14  ;;  %p1145_p11 = scmp.lt.u32.totalorder %s1141_s14, %s1433_s8 }
 0x485   :  { %p1147_p12 = pnand %p1145_p11, %p1142_p10 }
 0x487   :  { %1150 = shalt.err (!%p1147_p12)
}
 0x488   :  { %666 = dma.vmem_to_hbm [thread:$0]  %s664_s30, 128, %s1433_s8, [#allocation5]  }
 0x489   :  { %s1151_s15 = scalar_lea.vmem %s674_s12, 16  ;;  %s1155_s16 = scalar_lea.vmem %s674_s12, 32 }
 0x48a   :  { %p1152_p13 = scmp.ne.s32.totalorder %s674_s12, %s1151_s15  ;;  %p1156_p0 = scmp.lt.s32.totalorder %s674_s12, %s674_s12 }
 0x48b   :  { %p1157_p1 = scmp.lt.s32.totalorder %s1155_s16, %s1151_s15 }
 0x48d   :  { %p1158_p2 = por %p1157_p1, %p1156_p0 }
 0x48f   :  { %p1159_p3 = pnand %p1158_p2, %p1152_p13 }
 0x491   :  { %1162 = shalt.err (!%p1159_p3)
}
 0x492   :  { %s1163_s4 = scalar_lea.hbm %s1434_s9, 16 }
 0x493   :  { %p1164_p4 = scmp.ne.s32.totalorder %s1434_s9, %s1163_s4  ;;  %p1167_p5 = scmp.lt.u32.totalorder %s1163_s4, %s1434_s9 }
 0x495   :  { %p1169_p6 = pnand %p1167_p5, %p1164_p4 }
 0x497   :  { %1172 = shalt.err (!%p1169_p6)
}
 0x498   :  { %676 = dma.vmem_to_hbm [thread:$0]  %s674_s12, 16, %s1434_s9, [#allocation13]  }
 0x499   :  { %1187 = dma.done.wait [#allocation5], 128  }
 0x49a   :  { %1188 = vsyncadd [#allocation5], 4294967168 }
 0x49b   :  { %1189 = dma.done.wait [#allocation13], 16  }
 0x49c   :  { %1190 = vsyncadd [#allocation13], 4294967280 }
 0x49d   :  { %683 = vsyncpa [#allocation4], 1 }
 0x49e   :  { %684 = vsyncpa [#allocation7], 1 }
 0x49f   :  { %685 = vsyncpa [#allocation10], 1 }
 0x4a0   :  { %686 = vsyncpa [#allocation5], 1 }
 0x4a1   :  { %687 = vsyncpa [#allocation13], 1 }

</bundles_post_ra>
